<compile_context>
chip_gen: v5e
topology: v5e:2x2
jax: 0.10.0
libtpu: 0.0.40
codegen_flags: <defaults>
</compile_context>

<pallas_src>
import jax
import jax.numpy as jnp
from jax import lax
from jax.experimental import pallas as pl
from jax.experimental.pallas import tpu as pltpu

# Static problem configuration (consistent with the module: Conv 64 -> 96).
N = 2                    # batch
CIN = 64                 # input channels (fixed by the module)
COUT = 96                # conv output channels
H = W = 17               # input spatial
K = 3                    # kernel size / pool window
S = 2                    # stride
HO = (H - K) // S + 1    # 8
WO = (W - K) // S + 1    # 8
C_TOTAL = CIN + COUT     # 160
KKC = K * K * CIN        # 576 (im2col contraction dim; lane-dense: 4.5 vregs)
M_TOTAL = N * HO * WO    # 128 (matmul M when the batch is folded)


def stem_concat_kernel(patch_ref, w_ref, bias_ref, mp_ref, conv_ref):
    """One M-block per grid step.

    patch_ref: (M_BLK, KKC)   VMEM f32   im2col patch, tap-major layout
    w_ref:     (KKC, COUT)    VMEM bf16  BN-scale-folded weights
    bias_ref:  (1, COUT)      VMEM f32   folded BN bias
    mp_ref:    (M_BLK, CIN)   VMEM f32   max-pool branch output
    conv_ref:  (M_BLK, COUT)  VMEM f32   conv+BN+ReLU branch output
    """
    patch = patch_ref[...]                                   # (M_BLK, 576) f32

    # --- Max-pool branch (VPU): max over the 9 taps, exact f32. ---
    mp = patch[:, 0:CIN]
    for t in range(1, K * K):
        mp = jnp.maximum(mp, patch[:, t * CIN:(t + 1) * CIN])
    mp_ref[...] = mp.astype(mp_ref.dtype)

    # --- Conv branch (MXU): single fused matmul, bf16 in / f32 accumulate. ---
    acc = jnp.dot(patch.astype(jnp.bfloat16), w_ref[...],
                  preferred_element_type=jnp.float32)        # (M_BLK, 96)
    conv_ref[...] = jnp.maximum(acc + bias_ref[0], 0.0).astype(conv_ref.dtype)


def _im2col(x_nhwc):
    """(N, H, W, CIN) -> (N*HO*WO, K*K*CIN), tap-major (tap outer, chan inner).

    Tiny layout transform (~288 KB) done once per call in the wrapper so the
    kernel itself is load -> matmul -> epilogue -> store.
    """
    taps = []
    for kh in range(K):
        for kw in range(K):
            taps.append(x_nhwc[:, kh:kh + S * (HO - 1) + 1:S,
                               kw:kw + S * (WO - 1) + 1:S, :])
    patch = jnp.concatenate(taps, axis=-1)                   # (N, HO, WO, 576)
    return patch.reshape(M_TOTAL, KKC)


def _grid_size():
    """2 grid steps on v7x (2 TensorCores/chip), 1 on single-TC v5e/v6e."""
    try:
        kind = jax.devices()[0].device_kind.lower()
    except Exception:
        kind = ""
    if any(tag in kind for tag in ("v7", "tpu7", "7x")) and M_TOTAL % 2 == 0:
        return 2
    return 1


def stem_concat_a(x_nhwc, w_hwio, bn_gamma, bn_beta, bn_mean, bn_var,
                  eps=1e-3):
    """x_nhwc: (N, H, W, 64) f32 -> (N, HO, WO, 160) f32 (= [maxpool | conv])."""
    # Fold BN (eval mode): scale into the weights, bias as a per-channel add.
    scale = bn_gamma / jnp.sqrt(bn_var + eps)                       # (COUT,)
    bias = (bn_beta - bn_mean * scale).reshape(1, COUT).astype(jnp.float32)

    # (K,K,CIN,COUT) -> (K*K*CIN, COUT); row index kh*K*CIN + kw*CIN + c matches
    # the tap-major patch layout.  Fold scale, then cast to bf16 for the MXU.
    w2d = (w_hwio.reshape(KKC, COUT) * scale[None, :]).astype(jnp.bfloat16)

    patch = _im2col(x_nhwc).astype(jnp.float32)                     # (128, 576)

    grid = _grid_size()
    m_blk = M_TOTAL // grid

    mp_flat, conv_flat = pl.pallas_call(
        stem_concat_kernel,
        out_shape=(
            jax.ShapeDtypeStruct((M_TOTAL, CIN), jnp.float32),
            jax.ShapeDtypeStruct((M_TOTAL, COUT), jnp.float32),
        ),
        grid_spec=pltpu.PrefetchScalarGridSpec(
            num_scalar_prefetch=0,
            grid=(grid,),
            in_specs=[
                pl.BlockSpec((m_blk, KKC), lambda i: (i, 0)),
                pl.BlockSpec((KKC, COUT), lambda i: (0, 0)),   # constant block
                pl.BlockSpec((1, COUT), lambda i: (0, 0)),     # constant block
            ],
            out_specs=[
                pl.BlockSpec((m_blk, CIN), lambda i: (i, 0)),
                pl.BlockSpec((m_blk, COUT), lambda i: (i, 0)),
            ],
        ),
        compiler_params=pltpu.CompilerParams(
            dimension_semantics=("parallel",)),
    )(patch, w2d, bias)

    mp = mp_flat.reshape(N, HO, WO, CIN)
    conv = conv_flat.reshape(N, HO, WO, COUT)
    return jnp.concatenate([mp, conv], axis=-1)                     # (N,8,8,160)


def reference(x_nhwc, w_hwio, bn_gamma, bn_beta, bn_mean, bn_var, eps=1e-3):
    """Pure-JAX reference with the same bf16-operand / f32-accumulate conv."""
    mp = lax.reduce_window(x_nhwc, -jnp.inf, lax.max,
                           (1, K, K, 1), (1, S, S, 1), 'VALID')
    scale = bn_gamma / jnp.sqrt(bn_var + eps)
    bias = bn_beta - bn_mean * scale
    w_folded = (w_hwio.reshape(KKC, COUT) * scale[None, :]
                ).reshape(K, K, CIN, COUT)
    conv = lax.conv_general_dilated(
        x_nhwc.astype(jnp.bfloat16), w_folded.astype(jnp.bfloat16),
        window_strides=(S, S), padding='VALID',
        dimension_numbers=('NHWC', 'HWIO', 'NHWC'),
        preferred_element_type=jnp.float32)
    conv = jnp.maximum(conv + bias, 0.0)
    return jnp.concatenate([mp, conv], axis=-1)


if __name__ == "__main__":
    key = jax.random.PRNGKey(0)
    kx, kw, kg, kb, km, kv = jax.random.split(key, 6)

    x = jax.random.normal(kx, (N, H, W, CIN), dtype=jnp.float32)
    w = jax.random.normal(kw, (K, K, CIN, COUT), dtype=jnp.float32) * 0.05
    gamma = 1.0 + 0.1 * jax.random.normal(kg, (COUT,), dtype=jnp.float32)
    beta = 0.1 * jax.random.normal(kb, (COUT,), dtype=jnp.float32)
    mean = 0.1 * jax.random.normal(km, (COUT,), dtype=jnp.float32)
    var = jnp.abs(jax.random.normal(kv, (COUT,), dtype=jnp.float32)) + 0.5

    out = stem_concat_a(x, w, gamma, beta, mean, var)
    out = jax.block_until_ready(out)

    ref = reference(x, w, gamma, beta, mean, var)
    assert out.shape == (N, HO, WO, C_TOTAL), out.shape
    # Max-pool branch is exact f32; conv branch uses bf16 MXU operands with
    # f32 accumulation (both kernel and reference), so only reassociation
    # noise remains.
    assert jnp.allclose(out, ref, atol=2e-3, rtol=2e-3), \
        float(jnp.max(jnp.abs(out - ref)))
    assert jnp.allclose(out[..., :CIN], ref[..., :CIN], atol=1e-6), \
        "max-pool branch mismatch"

    print("KERNEL_OK")
</pallas_src>

<mosaic_0001>
module attributes {stable_mosaic.version = 11 : i64} {
  func.func @stem_concat_kernel(%arg0: i32, %arg1: memref<128x576xf32, #tpu.memory_space<vmem>>, %arg2: memref<576x96xbf16, #tpu.memory_space<vmem>>, %arg3: memref<1x96xf32, #tpu.memory_space<vmem>>, %arg4: memref<128x64xf32, #tpu.memory_space<vmem>>, %arg5: memref<128x96xf32, #tpu.memory_space<vmem>>) attributes {dimension_semantics = [#tpu.dimension_semantics<parallel>], iteration_bounds = array<i64: 1>, scalar_prefetch = 0 : i64, scratch_operands = 0 : i64, tpu.core_type = #tpu.core_type<tc>, window_params = [{transform_indices = @transform_0, window_bounds = array<i64: 128, 576>}, {pipeline_mode = #tpu.pipeline_mode<synchronous>, transform_indices = @transform_1, window_bounds = array<i64: 576, 96>}, {pipeline_mode = #tpu.pipeline_mode<synchronous>, transform_indices = @transform_2, window_bounds = array<i64: 1, 96>}, {transform_indices = @transform_3, window_bounds = array<i64: 128, 64>}, {transform_indices = @transform_4, window_bounds = array<i64: 128, 96>}]} {
    %c0 = arith.constant 0 : index
    %c0_0 = arith.constant 0 : index
    %0 = vector.load %arg1[%c0, %c0_0] : memref<128x576xf32, #tpu.memory_space<vmem>>, vector<128x576xf32>
    %1 = vector.extract_strided_slice %0 {offsets = [0, 0], sizes = [128, 64], strides = [1, 1]} : vector<128x576xf32> to vector<128x64xf32>
    %2 = vector.extract_strided_slice %0 {offsets = [0, 64], sizes = [128, 64], strides = [1, 1]} : vector<128x576xf32> to vector<128x64xf32>
    %3 = arith.maximumf %1, %2 : vector<128x64xf32>
    %4 = vector.extract_strided_slice %0 {offsets = [0, 128], sizes = [128, 64], strides = [1, 1]} : vector<128x576xf32> to vector<128x64xf32>
    %5 = arith.maximumf %3, %4 : vector<128x64xf32>
    %6 = vector.extract_strided_slice %0 {offsets = [0, 192], sizes = [128, 64], strides = [1, 1]} : vector<128x576xf32> to vector<128x64xf32>
    %7 = arith.maximumf %5, %6 : vector<128x64xf32>
    %8 = vector.extract_strided_slice %0 {offsets = [0, 256], sizes = [128, 64], strides = [1, 1]} : vector<128x576xf32> to vector<128x64xf32>
    %9 = arith.maximumf %7, %8 : vector<128x64xf32>
    %10 = vector.extract_strided_slice %0 {offsets = [0, 320], sizes = [128, 64], strides = [1, 1]} : vector<128x576xf32> to vector<128x64xf32>
    %11 = arith.maximumf %9, %10 : vector<128x64xf32>
    %12 = vector.extract_strided_slice %0 {offsets = [0, 384], sizes = [128, 64], strides = [1, 1]} : vector<128x576xf32> to vector<128x64xf32>
    %13 = arith.maximumf %11, %12 : vector<128x64xf32>
    %14 = vector.extract_strided_slice %0 {offsets = [0, 448], sizes = [128, 64], strides = [1, 1]} : vector<128x576xf32> to vector<128x64xf32>
    %15 = arith.maximumf %13, %14 : vector<128x64xf32>
    %16 = vector.extract_strided_slice %0 {offsets = [0, 512], sizes = [128, 64], strides = [1, 1]} : vector<128x576xf32> to vector<128x64xf32>
    %17 = arith.maximumf %15, %16 : vector<128x64xf32>
    %c0_1 = arith.constant 0 : index
    %c0_2 = arith.constant 0 : index
    %18 = vector.load %arg4[%c0_1, %c0_2] : memref<128x64xf32, #tpu.memory_space<vmem>>, vector<128x64xf32>
    tpu.vector_store %arg4[%c0_1, %c0_2], %17 {strides = array<i32>} : memref<128x64xf32, #tpu.memory_space<vmem>>, vector<128x64xf32>,
    %19 = arith.truncf %0 : vector<128x576xf32> to vector<128x576xbf16>
    %c0_3 = arith.constant 0 : index
    %c0_4 = arith.constant 0 : index
    %20 = vector.load %arg2[%c0_3, %c0_4] : memref<576x96xbf16, #tpu.memory_space<vmem>>, vector<576x96xbf16>
    %cst = arith.constant dense<0.000000e+00> : vector<128x96xf32>
    %21 = tpu.matmul %19, %20, %cst {dimension_numbers = #tpu.dot_dimension_numbers<[1], [0], [0], [1], [0, 0, 1, 1], [], []>} : vector<128x576xbf16>, vector<576x96xbf16>, vector<128x96xf32> -> vector<128x96xf32>
    %c0_5 = arith.constant 0 : index
    %c0_6 = arith.constant 0 : index
    %22 = vector.load %arg3[%c0_5, %c0_6] : memref<1x96xf32, #tpu.memory_space<vmem>>, vector<1x96xf32>
    %23 = vector.shape_cast %22 : vector<1x96xf32> to vector<96xf32>
    %24 = vector.shape_cast %23 : vector<96xf32> to vector<1x96xf32>
    %25 = vector.broadcast %24 : vector<1x96xf32> to vector<128x96xf32>
    %26 = arith.addf %21, %25 : vector<128x96xf32>
    %cst_7 = arith.constant 0.000000e+00 : f32
    %27 = vector.broadcast %cst_7 : f32 to vector<128x96xf32>
    %28 = arith.maximumf %26, %27 : vector<128x96xf32>
    %c0_8 = arith.constant 0 : index
    %c0_9 = arith.constant 0 : index
    %29 = vector.load %arg5[%c0_8, %c0_9] : memref<128x96xf32, #tpu.memory_space<vmem>>, vector<128x96xf32>
    tpu.vector_store %arg5[%c0_8, %c0_9], %28 {strides = array<i32>} : memref<128x96xf32, #tpu.memory_space<vmem>>, vector<128x96xf32>,
    return
  }
  func.func @transform_0(%arg0: i32) -> (i32, i32) {
    %c0_i32 = arith.constant 0 : i32
    %c0_i32_0 = arith.constant 0 : i32
    return %arg0, %c0_i32 : i32, i32
  }
  func.func @transform_1(%arg0: i32) -> (i32, i32) {
    %c0_i32 = arith.constant 0 : i32
    %c0_i32_0 = arith.constant 0 : i32
    %c0_i32_1 = arith.constant 0 : i32
    return %c0_i32, %c0_i32_0 : i32, i32
  }
  func.func @transform_2(%arg0: i32) -> (i32, i32) {
    %c0_i32 = arith.constant 0 : i32
    %c0_i32_0 = arith.constant 0 : i32
    %c0_i32_1 = arith.constant 0 : i32
    return %c0_i32, %c0_i32_0 : i32, i32
  }
  func.func @transform_3(%arg0: i32) -> (i32, i32) {
    %c0_i32 = arith.constant 0 : i32
    %c0_i32_0 = arith.constant 0 : i32
    return %arg0, %c0_i32 : i32, i32
  }
  func.func @transform_4(%arg0: i32) -> (i32, i32) {
    %c0_i32 = arith.constant 0 : i32
    %c0_i32_0 = arith.constant 0 : i32
    return %arg0, %c0_i32 : i32, i32
  }
}

</mosaic_0001>

<bundles_post_ra>
// kernel: tpu_custom_call.1
= control target key start
LH: loop header
LB: loop body
LE: loop exit
PB: predicated region body
PF: predicated region fallthrough
CT: control target
= control target key end

     0   :  { %s1354_s21 = smov 64   ;;  %vm481_vm0 = vcmask 523264   ;;  %vm1115_vm1 = vcmask 785408   ;;  %s2531_s0 = inlined_call_operand.vmem [shape: f32[128,576], index: 0, kind: input, shape index: {}]   ;;  %s2532_s1 = inlined_call_operand.vmem [shape: bf16[576,96], index: 1, kind: input, shape index: {}]   ;;  %s2533_s2 = inlined_call_operand.vmem [shape: f32[1,96], index: 2, kind: input, shape index: {}]   ;;  %s2534_s4 = inlined_call_operand.vmem [shape: f32[128,96], index: 4, kind: output, shape index: {1}]   ;;  %s2535_s3 = inlined_call_operand.vmem [shape: f32[128,64], index: 3, kind: output, shape index: {0}]  }
   0x1   :  { %v1383_v0 = vld [vmem:[%s2531_s0 + $0xa0] sm:$0xff]  ;;  %v1388_v1 = vld [vmem:[%s2531_s0 + $0x50] sm:$0xff]  ;;  %v1299_v3 = vld [vmem:[%s2532_s1 + $0x38] sm:$0xff] }
   0x2   :  { %v1393_v2 = vld [vmem:[%s2531_s0] sm:$0xff]  ;;  %121 = vrot.lane.b32.xlu2 %v1383_v0, %s1354_s21  ;;  %117 = vrot.lane.b32.xlu1 %v1388_v1, %s1354_s21  ;;  %v1298_v4 = vld [vmem:[%s2532_s1 + $0x30] sm:$0xff] }
   0x3   :  { %113 = vrot.lane.b32.xlu0 %v1393_v2, %s1354_s21  ;;  %1328 = vmatpush.bf16.msra.mxu1 %v1299_v3  ;;  %v1410_v5 = vld [vmem:[%s2531_s0 + $0xc8] sm:$0xff]  ;;  %v1415_v6 = vld [vmem:[%s2531_s0 + $0x78] sm:$0xff]  ;;  %v1296_v9 = vld [vmem:[%s2532_s1 + $0x20] sm:$0xff] }
   0x4   :  { %1329 = vmatpush.bf16.msra.mxu2 %v1299_v3  ;;  %1330 = vmatpush.bf16.msra.mxu3 %v1299_v3  ;;  %v1420_v7 = vld [vmem:[%s2531_s0 + $0x28] sm:$0xff]  ;;  %v1437_v10 = vld [vmem:[%s2531_s0 + $0x140] sm:$0xff]  ;;  %v1442_v11 = vld [vmem:[%s2531_s0 + $0x118] sm:$0xff]  ;;  %v508_v23 = vpack.c.bf16 %v1410_v5, %v1383_v0  ;;  %v503_v54 = vpack.c.bf16 %v1415_v6, %v1388_v1 }
   0x5   :  { %854 = vmatpush.bf16.msra.mxu0 %v1299_v3  ;;  %v1297_v8 = vld [vmem:[%s2532_s1 + $0x28] sm:$0xff]  ;;  %v1447_v12 = vld [vmem:[%s2531_s0 + $0xf0] sm:$0xff]  ;;  %v1295_v13 = vld [vmem:[%s2532_s1 + $0x18] sm:$0xff]  ;;  %v498_v29 = vpack.c.bf16 %v1420_v7, %v1393_v2 }
   0x6   :  { %v1294_v14 = vld [vmem:[%s2532_s1 + $0x10] sm:$0xff]  ;;  %v1464_v15 = vld [vmem:[%s2531_s0 + $0x1b8] sm:$0xff]  ;;  %v1474_v17 = vld [vmem:[%s2531_s0 + $0x168] sm:$0xff]  ;;  %v513_v48 = vpack.c.bf16 %v1442_v11, %v1447_v12 }
   0x7   :  { %1331 = vmatpush.bf16.msra.mxu1 %v1298_v4  ;;  %2572 = vst [vmem:[#allocation2_spill] sm:$0xff] %v1464_v15  ;;  %v1469_v16 = vld [vmem:[%s2531_s0 + $0x190] sm:$0xff]  ;;  %v1293_v18 = vld [vmem:[%s2532_s1 + $0x8] sm:$0xff]  ;;  %v1292_v19 = vld [vmem:[%s2532_s1] sm:$0xff]  ;;  %v518_v24 = vpack.c.bf16 %v1474_v17, %v1437_v10 }
   0x8   :  { %1332 = vmatpush.bf16.msra.mxu2 %v1298_v4  ;;  %1333 = vmatpush.bf16.msra.mxu3 %v1298_v4  ;;  %v1491_v20 = vld [vmem:[%s2531_s0 + $0x208] sm:$0xff]  ;;  %v1496_v21 = vld [vmem:[%s2531_s0 + $0x1e0] sm:$0xff]  ;;  %v1501_v22 = vld [vmem:[%s2531_s0 + $0x230] sm:$0xff]  ;;  %v523_v49 = vpack.c.bf16 %v1464_v15, %v1469_v16 }
   0x9   :  { %855 = vmatpush.bf16.msra.mxu0 %v1298_v4  ;;  %2573 = vst [vmem:[#allocation3_spill] sm:$0xff] %v1501_v22  ;;  %v528_v25 = vpack.c.bf16 %v1491_v20, %v1496_v21  ;;  %v1315_v26 = vld [vmem:[%s2532_s1 + $0xb8] sm:$0xff]  ;;  %v1314_v31 = vld [vmem:[%s2532_s1 + $0xb0] sm:$0xff]  ;;  %v1546_v35 = vld [vmem:[%s2531_s0 + $0x8] sm:$0xff] }
   0xa   :  { %123 = vrot.lane.b32.xlu2 %v1410_v5, %s1354_s21  ;;  %119 = vrot.lane.b32.xlu1 %v1415_v6, %s1354_s21  ;;  %v1307_v27 = vld [vmem:[%s2532_s1 + $0x78] sm:$0xff]  ;;  %v1306_v32 = vld [vmem:[%s2532_s1 + $0x70] sm:$0xff] }
   0xb   :  { %115 = vrot.lane.b32.xlu0 %v1420_v7, %s1354_s21  ;;  %1334 = vmatpush.bf16.msra.mxu1 %v1297_v8  ;;  %v1323_v28 = vld [vmem:[%s2532_s1 + $0xf8] sm:$0xff]  ;;  %v1322_v33 = vld [vmem:[%s2532_s1 + $0xf0] sm:$0xff]  ;;  %v1313_v38 = vld [vmem:[%s2532_s1 + $0xa8] sm:$0xff] }
   0xc   :  { %1335 = vmatpush.bf16.msra.mxu2 %v1297_v8  ;;  %1336 = vmatpush.bf16.msra.mxu3 %v1297_v8  ;;  %v1327_v30 = vld [vmem:[%s2532_s1 + $0x118] sm:$0xff]  ;;  %v1541_v34 = vld [vmem:[%s2531_s0 + $0x30] sm:$0xff]  ;;  %v1305_v39 = vld [vmem:[%s2532_s1 + $0x68] sm:$0xff] }
   0xd   :  { %856 = vmatpush.bf16.msra.mxu0 %v1297_v8  ;;  %v1551_v36 = vld [vmem:[%s2531_s0 + $0x258] sm:$0xff]  ;;  %v1326_v37 = vld [vmem:[%s2532_s1 + $0x110] sm:$0xff]  ;;  %v1321_v40 = vld [vmem:[%s2532_s1 + $0xe8] sm:$0xff] }
   0xe   :  { %v1325_v41 = vld [vmem:[%s2532_s1 + $0x108] sm:$0xff]  ;;  %v1312_v42 = vld [vmem:[%s2532_s1 + $0xa0] sm:$0xff]  ;;  %v1596_v47 = vld [vmem:[%s2531_s0 + $0x58] sm:$0xff]  ;;  %v533_v50 = vpack.c.bf16 %v1551_v36, %v1501_v22 }
   0xf   :  { %1337 = vmatpush.bf16.msra.mxu1 %v1296_v9  ;;  %v1304_v43 = vld [vmem:[%s2532_s1 + $0x60] sm:$0xff]  ;;  %v1586_v45 = vld [vmem:[%s2531_s0 + $0xa8] sm:$0xff]  ;;  %v1311_v51 = vld [vmem:[%s2532_s1 + $0x98] sm:$0xff] }
  0x10   :  { %1338 = vmatpush.bf16.msra.mxu2 %v1296_v9  ;;  %1339 = vmatpush.bf16.msra.mxu3 %v1296_v9  ;;  %v1320_v44 = vld [vmem:[%s2532_s1 + $0xe0] sm:$0xff]  ;;  %v1303_v52 = vld [vmem:[%s2532_s1 + $0x58] sm:$0xff]  ;;  %v1310_v56 = vld [vmem:[%s2532_s1 + $0x90] sm:$0xff] }
  0x11   :  { %857 = vmatpush.bf16.msra.mxu0 %v1296_v9  ;;  %v1591_v46 = vld [vmem:[%s2531_s0 + $0x80] sm:$0xff]  ;;  %v1319_v53 = vld [vmem:[%s2532_s1 + $0xd8] sm:$0xff]  ;;  %v1302_v57 = vld [vmem:[%s2532_s1 + $0x50] sm:$0xff] }
  0x12   :  { %129 = vrot.lane.b32.xlu2 %v1437_v10, %s1354_s21  ;;  %127 = vrot.lane.b32.xlu1 %v1442_v11, %s1354_s21  ;;  %v1324_v55 = vld [vmem:[%s2532_s1 + $0x100] sm:$0xff]  ;;  %v1318_v58 = vld [vmem:[%s2532_s1 + $0xd0] sm:$0xff] }
  0x13   :  { %125 = vrot.lane.b32.xlu0 %v1447_v12, %s1354_s21  ;;  %1340 = vmatpush.bf16.msra.mxu1 %v1295_v13  ;;  %v1636_v59 = vld [vmem:[%s2531_s0 + $0x120] sm:$0xff]  ;;  %v1641_v60 = vld [vmem:[%s2531_s0 + $0xf8] sm:$0xff]  ;;  %v1646_v61 = vld [vmem:[%s2531_s0 + $0xd0] sm:$0xff] }
  0x14   :  { %1341 = vmatpush.bf16.msra.mxu2 %v1295_v13  ;;  %1342 = vmatpush.bf16.msra.mxu3 %v1295_v13  ;;  %v1309_v62 = vld [vmem:[%s2532_s1 + $0x88] sm:$0xff]  ;;  %v1308_v4 = vld [vmem:[%s2532_s1 + $0x80] sm:$0xff]  ;;  %v1672_v9 = vld [vmem:[%s2531_s0 + $0x10] sm:$0xff] }
  0x15   :  { %858 = vmatpush.bf16.msra.mxu0 %v1295_v13  ;;  %v1301_v63 = vld [vmem:[%s2532_s1 + $0x48] sm:$0xff]  ;;  %v1300_v8 = vld [vmem:[%s2532_s1 + $0x40] sm:$0xff]  ;;  %v1677_v13 = vld [vmem:[%s2531_s0 + $0x38] sm:$0xff] }
  0x16   :  { %v1317_v3 = vld [vmem:[%s2532_s1 + $0xc8] sm:$0xff]  ;;  %2574 = vst [vmem:[#allocation4_spill] sm:$0xff] %v1677_v13 }
  0x17   :  { %1343 = vmatpush.bf16.msra.mxu1 %v1294_v14 }
  0x18   :  { %1344 = vmatpush.bf16.msra.mxu2 %v1294_v14  ;;  %1345 = vmatpush.bf16.msra.mxu3 %v1294_v14 }
  0x19   :  { %859 = vmatpush.bf16.msra.mxu0 %v1294_v14  ;;  %v1316_v14 = vld [vmem:[%s2532_s1 + $0xc0] sm:$0xff] }
  0x1a   :  { %135 = vrot.lane.b32.xlu2 %v1464_v15, %s1354_s21  ;;  %133 = vrot.lane.b32.xlu1 %v1469_v16, %s1354_s21 }
  0x1b   :  { %131 = vrot.lane.b32.xlu0 %v1474_v17, %s1354_s21  ;;  %1346 = vmatpush.bf16.msra.mxu1 %v1293_v18 }
  0x1c   :  { %1347 = vmatpush.bf16.msra.mxu2 %v1293_v18  ;;  %1348 = vmatpush.bf16.msra.mxu3 %v1293_v18 }
  0x1d   :  { %860 = vmatpush.bf16.msra.mxu0 %v1293_v18  ;;  %v1685_v18 = vld [vmem:[%s2531_s0 + $0x18] sm:$0xff] }
  0x1e   :  { %2575 = vst [vmem:[#allocation5_spill] sm:$0xff] %v1685_v18 }
  0x1f   :  { %1349 = vmatpush.bf16.msra.mxu1 %v1292_v19 }
  0x20   :  { %1350 = vmatpush.bf16.msra.mxu2 %v1292_v19  ;;  %1351 = vmatpush.bf16.msra.mxu3 %v1292_v19 }
  0x21   :  { %861 = vmatpush.bf16.msra.mxu0 %v1292_v19  ;;  %v1690_v19 = vld [vmem:[%s2531_s0 + $0x40] sm:$0xff] }
  0x22   :  { %141 = vrot.lane.b32.xlu2 %v1501_v22, %s1354_s21  ;;  %139 = vrot.lane.b32.xlu1 %v1491_v20, %s1354_s21  ;;  %2576 = vst [vmem:[#allocation6_spill] sm:$0xff] %v1690_v19  ;;  %v1983_v22 = vld [vmem:[%s2531_s0 + $0x180] sm:$0xff] }
  0x23   :  { %137 = vrot.lane.b32.xlu0 %v1496_v21, %s1354_s21  ;;  %872 = vmatmul.bf16.vlgmr.msra.gmra.mxu1 %v508_v23  ;;  %v1695_v23 = vld [vmem:[%s2531_s0 + $0x198] sm:$0xff]  ;;  %2596 = vst [vmem:[#allocation26_spill] sm:$0xff] %v1983_v22 }
  0x24   :  { %882 = vmatmul.bf16.vlgmr.msra.gmra.mxu2 %v518_v24  ;;  %892 = vmatmul.bf16.vlgmr.msra.gmra.mxu3 %v528_v25  ;;  %v1700_v24 = vld [vmem:[%s2531_s0 + $0x170] sm:$0xff]  ;;  %v500_v25 = vpack.c.bf16 %v1677_v13, %v1672_v9 }
  0x25   :  { %952 = vmatpush.bf16.msrb.mxu2 %v1315_v26  ;;  %903 = vmatpush.bf16.msrb.mxu1 %v1307_v27  ;;  %v1707_v26 = vld [vmem:[%s2531_s0 + $0x20] sm:$0xff]  ;;  %v1712_v27 = vld [vmem:[%s2531_s0 + $0x48] sm:$0xff] }
  0x26   :  { %1001 = vmatpush.bf16.msrb.mxu3 %v1323_v28  ;;  %862 = vmatmul.bf16.vlgmr.msra.gmra.mxu0 %v498_v29  ;;  %2577 = vst [vmem:[#allocation7_spill] sm:$0xff] %v1707_v26  ;;  %v1717_v28 = vld [vmem:[%s2531_s0 + $0x148] sm:$0xff]  ;;  %v499_v29 = vpack.c.bf16 %v1541_v34, %v1546_v35 }
  0x27   :  { %1054 = vmatpush.bf16.msrb.mxu0 %v1327_v30  ;;  %2578 = vst [vmem:[#allocation8_spill] sm:$0xff] %v1712_v27  ;;  %v501_v30 = vpack.c.bf16 %v1690_v19, %v1685_v18 }
  0x29   :  { %953 = vmatpush.bf16.msrb.mxu2 %v1314_v31  ;;  %904 = vmatpush.bf16.msrb.mxu1 %v1306_v32  ;;  %v502_v31 = vpack.c.bf16 %v1712_v27, %v1707_v26  ;;  %v1735_v32 = vld [vmem:[%s2531_s0 + $0x210] sm:$0xff] }
  0x2a   :  { %1002 = vmatpush.bf16.msrb.mxu3 %v1322_v33  ;;  %211 = vrot.lane.b32.xlu2 %v1541_v34, %s1354_s21  ;;  %v1740_v33 = vld [vmem:[%s2531_s0 + $0x1e8] sm:$0xff] }
  0x2b   :  { %209 = vrot.lane.b32.xlu1 %v1546_v35, %s1354_s21  ;;  %143 = vrot.lane.b32.xlu0 %v1551_v36, %s1354_s21 }
  0x2c   :  { %1055 = vmatpush.bf16.msrb.mxu0 %v1326_v37  ;;  %v1745_v37 = vld [vmem:[%s2531_s0 + $0x1c0] sm:$0xff] }
  0x2d   :  { %954 = vmatpush.bf16.msrb.mxu2 %v1313_v38  ;;  %905 = vmatpush.bf16.msrb.mxu1 %v1305_v39  ;;  %v1756_v38 = vld [vmem:[%s2531_s0 + $0x60] sm:$0xff]  ;;  %v1761_v39 = vld [vmem:[%s2531_s0 + $0x88] sm:$0xff] }
  0x2e   :  { %1003 = vmatpush.bf16.msrb.mxu3 %v1321_v40  ;;  %v1766_v40 = vld [vmem:[%s2531_s0 + $0x68] sm:$0xff] }
  0x30   :  { %1056 = vmatpush.bf16.msrb.mxu0 %v1325_v41  ;;  %v1771_v41 = vld [vmem:[%s2531_s0 + $0x90] sm:$0xff] }
  0x31   :  { %955 = vmatpush.bf16.msrb.mxu2 %v1312_v42  ;;  %906 = vmatpush.bf16.msrb.mxu1 %v1304_v43  ;;  %2579 = vst [vmem:[#allocation9_spill] sm:$0xff] %v1771_v41  ;;  %v1776_v42 = vld [vmem:[%s2531_s0 + $0x260] sm:$0xff]  ;;  %v505_v43 = vpack.c.bf16 %v1761_v39, %v1756_v38 }
  0x32   :  { %1004 = vmatpush.bf16.msrb.mxu3 %v1320_v44  ;;  %217 = vrot.lane.b32.xlu2 %v1586_v45, %s1354_s21  ;;  %v1783_v44 = vld [vmem:[%s2531_s0 + $0x70] sm:$0xff] }
  0x33   :  { %215 = vrot.lane.b32.xlu1 %v1591_v46, %s1354_s21  ;;  %213 = vrot.lane.b32.xlu0 %v1596_v47, %s1354_s21  ;;  %2580 = vst [vmem:[#allocation10_spill] sm:$0xff] %v1783_v44 }
  0x34   :  { %877 = vmatmul.bf16.gmra.mxu1 %v513_v48  ;;  %887 = vmatmul.bf16.gmra.mxu2 %v523_v49  ;;  %v1788_v48 = vld [vmem:[%s2531_s0 + $0x98] sm:$0xff] }
  0x35   :  { %897 = vmatmul.bf16.gmra.mxu3 %v533_v50  ;;  %956 = vmatpush.bf16.msrb.mxu2 %v1311_v51  ;;  %2581 = vst [vmem:[#allocation11_spill] sm:$0xff] %v1788_v48  ;;  %v1793_v49 = vld [vmem:[%s2531_s0 + $0x238] sm:$0xff]  ;;  %v504_v50 = vpack.c.bf16 %v1591_v46, %v1596_v47  ;;  %v506_v51 = vpack.c.bf16 %v1771_v41, %v1766_v40 }
  0x36   :  { %907 = vmatpush.bf16.msrb.mxu1 %v1303_v52  ;;  %1005 = vmatpush.bf16.msrb.mxu3 %v1319_v53  ;;  %v507_v52 = vpack.c.bf16 %v1788_v48, %v1783_v44 }
  0x37   :  { %867 = vmatmul.bf16.gmra.mxu0 %v503_v54  ;;  %v1817_v54 = vld [vmem:[%s2531_s0 + $0xd8] sm:$0xff] }
  0x38   :  { %1057 = vmatpush.bf16.msrb.mxu0 %v1324_v55  ;;  %2582 = vst [vmem:[#allocation12_spill] sm:$0xff] %v1817_v54  ;;  %v1822_v55 = vld [vmem:[%s2531_s0 + $0xb0] sm:$0xff] }
  0x39   :  { %957 = vmatpush.bf16.msrb.mxu2 %v1310_v56  ;;  %2583 = vst [vmem:[#allocation13_spill] sm:$0xff] %v1822_v55  ;;  %v1827_v56 = vld [vmem:[%s2531_s0 + $0xb8] sm:$0xff] }
  0x3a   :  { %908 = vmatpush.bf16.msrb.mxu1 %v1302_v57  ;;  %1006 = vmatpush.bf16.msrb.mxu3 %v1318_v58  ;;  %2584 = vst [vmem:[#allocation14_spill] sm:$0xff] %v1827_v56  ;;  %v1832_v57 = vld [vmem:[%s2531_s0 + $0xe0] sm:$0xff] }
  0x3b   :  { %223 = vrot.lane.b32.xlu2 %v1636_v59, %s1354_s21  ;;  %221 = vrot.lane.b32.xlu1 %v1641_v60, %s1354_s21  ;;  %v1837_v58 = vld [vmem:[%s2531_s0 + $0x100] sm:$0xff] }
  0x3c   :  { %219 = vrot.lane.b32.xlu0 %v1646_v61, %s1354_s21 }
  0x3d   :  { %958 = vmatpush.bf16.msrb.mxu2 %v1309_v62  ;;  %v510_v62 = vpack.c.bf16 %v1817_v54, %v1822_v55 }
  0x3e   :  { %909 = vmatpush.bf16.msrb.mxu1 %v1301_v63  ;;  %1007 = vmatpush.bf16.msrb.mxu3 %v1317_v3  ;;  %v1844_v63 = vld [vmem:[%s2531_s0 + $0xc0] sm:$0xff]  ;;  %v1849_v3 = vld [vmem:[%s2531_s0 + $0xe8] sm:$0xff] }
  0x3f   :  { %2585 = vst [vmem:[#allocation15_spill] sm:$0xff] %v1844_v63 }
  0x40   :  { %2586 = vst [vmem:[#allocation16_spill] sm:$0xff] %v1849_v3 }
  0x41   :  { %959 = vmatpush.bf16.msrb.mxu2 %v1308_v4  ;;  %v509_v4 = vpack.c.bf16 %v1646_v61, %v1586_v45 }
  0x42   :  { %910 = vmatpush.bf16.msrb.mxu1 %v1300_v8  ;;  %1008 = vmatpush.bf16.msrb.mxu3 %v1316_v14  ;;  %v511_v8 = vpack.c.bf16 %v1832_v57, %v1827_v56  ;;  %v512_v14 = vpack.c.bf16 %v1849_v3, %v1844_v63 }
  0x43   :  { %229 = vrot.lane.b32.xlu2 %v1695_v23, %s1354_s21  ;;  %227 = vrot.lane.b32.xlu1 %v1700_v24, %s1354_s21 }
  0x44   :  { %225 = vrot.lane.b32.xlu0 %v1717_v28, %s1354_s21  ;;  %960 = vmatmul.bf16.vlgmr.msrb.gmra.mxu2 %v500_v25 }
  0x45   :  { %911 = vmatmul.bf16.vlgmr.msrb.gmra.mxu1 %v499_v29  ;;  %1009 = vmatmul.bf16.vlgmr.msrb.gmra.mxu3 %v501_v30  ;;  %v1869_v29 = vld [vmem:[%s2531_s0 + $0x178] sm:$0xff]  ;;  %v1874_v30 = vld [vmem:[%s2531_s0 + $0x150] sm:$0xff] }
  0x46   :  { %2587 = vst [vmem:[#allocation17_spill] sm:$0xff] %v1874_v30  ;;  %v520_v3 = vpack.c.bf16 %v1869_v29, %v1874_v30 }
  0x47   :  { %1284 = vmatmul.msk.bf16.vlgmr.msrb.gmra.mxu0 %vm481_vm0, %v502_v31 }
  0x4b   :  { %235 = vrot.lane.b32.xlu2 %v1735_v32, %s1354_s21  ;;  %233 = vrot.lane.b32.xlu1 %v1740_v33, %s1354_s21 }
  0x4c   :  { %231 = vrot.lane.b32.xlu0 %v1745_v37, %s1354_s21 }
  0x53   :  { %305 = vrot.lane.b32.xlu2 %v1672_v9, %s1354_s21  ;;  %239 = vrot.lane.b32.xlu1 %v1776_v42, %s1354_s21 }
  0x54   :  { %237 = vrot.lane.b32.xlu0 %v1793_v49, %s1354_s21  ;;  %965 = vmatmul.bf16.gmra.mxu2 %v505_v43  ;;  %v1880_v43 = vld [vmem:[%s2531_s0 + $0x128] sm:$0xff] }
  0x55   :  { %916 = vmatmul.bf16.gmra.mxu1 %v504_v50  ;;  %1014 = vmatmul.bf16.gmra.mxu3 %v506_v51  ;;  %2588 = vst [vmem:[#allocation18_spill] sm:$0xff] %v1880_v43 }
  0x57   :  { %1285 = vmatmul.msk.bf16.gmra.mxu0 %vm481_vm0, %v507_v52  ;;  %v1901_v52 = vld [vmem:[%s2531_s0 + $0x130] sm:$0xff] }
  0x58   :  { %2590 = vst [vmem:[#allocation20_spill] sm:$0xff] %v1901_v52 }
  0x5b   :  { %311 = vrot.lane.b32.xlu2 %v1761_v39, %s1354_s21  ;;  %309 = vrot.lane.b32.xlu1 %v1756_v38, %s1354_s21 }
  0x5c   :  { %307 = vrot.lane.b32.xlu0 %v1677_v13, %s1354_s21  ;;  %v122_v53 = vpop.permute.xlu2 %121  ;;  %v1978_v13 = vld [vmem:[%s2531_s0 + $0x158] sm:$0xff] }
  0x5d   :  { %v165_v31 = vmax.f32 %v1383_v0, %v122_v53  ;;  %v1896_v0 = vld [vmem:[%s2531_s0 + $0x108] sm:$0xff]  ;;  %v1906_v53 = vld [vmem:[%s2531_s0 + $0x1f0] sm:$0xff]  ;;  %v521_v15 = vpack.c.bf16 %v1983_v22, %v1978_v13 }
  0x5e   :  { %v516_v48 = vpack.c.bf16 %v1901_v52, %v1896_v0 }
  0x5f   :  { %v1891_v51 = vmax.f32 %v165_v31, %v1586_v45  ;;  %v1911_v45 = vld [vmem:[%s2531_s0 + $0x1c8] sm:$0xff]  ;;  %v514_v31 = vpack.c.bf16 %v1636_v59, %v1641_v60 }
  0x60   :  { %2591 = vst [vmem:[#allocation21_spill] sm:$0xff] %v1911_v45 }
  0x61   :  { %2589 = vst [vmem:[#allocation19_spill] sm:$0xff] %v1891_v51 }
  0x63   :  { %317 = vrot.lane.b32.xlu2 %v1837_v58, %s1354_s21  ;;  %315 = vrot.lane.b32.xlu1 %v1817_v54, %s1354_s21 }
  0x64   :  { %313 = vrot.lane.b32.xlu0 %v1822_v55, %s1354_s21  ;;  %970 = vmatmul.bf16.gmra.mxu2 %v510_v62  ;;  %v1863_v25 = vpop.permute.xlu2 %123  ;;  %v515_v62 = vpack.c.bf16 %v1880_v43, %v1837_v58  ;;  %v1952_v55 = vld [vmem:[%s2531_s0 + $0x268] sm:$0xff] }
  0x65   :  { %921 = vmatmul.bf16.gmra.mxu1 %v509_v4  ;;  %1019 = vmatmul.bf16.gmra.mxu3 %v511_v8  ;;  %v1918_v4 = vld [vmem:[%s2531_s0 + $0x110] sm:$0xff]  ;;  %v1923_v8 = vld [vmem:[%s2531_s0 + $0x138] sm:$0xff] }
  0x66   :  { %2592 = vst [vmem:[#allocation22_spill] sm:$0xff] %v1918_v4  ;;  %v517_v63 = vpack.c.bf16 %v1923_v8, %v1918_v4  ;;  %v1957_v4 = vld [vmem:[%s2531_s0 + $0x240] sm:$0xff] }
  0x67   :  { %1286 = vmatmul.msk.bf16.gmra.mxu0 %vm481_vm0, %v512_v14  ;;  %2593 = vst [vmem:[#allocation23_spill] sm:$0xff] %v1923_v8  ;;  %v1928_v14 = vld [vmem:[%s2531_s0 + $0x1a0] sm:$0xff] }
  0x6b   :  { %323 = vrot.lane.b32.xlu2 %v1869_v29, %s1354_s21  ;;  %321 = vrot.lane.b32.xlu1 %v1874_v30, %s1354_s21 }
  0x6c   :  { %319 = vrot.lane.b32.xlu0 %v1880_v43, %s1354_s21  ;;  %v1888_v50 = vpop.permute.xlu2 %129 }
  0x73   :  { %329 = vrot.lane.b32.xlu2 %v1906_v53, %s1354_s21  ;;  %327 = vrot.lane.b32.xlu1 %v1911_v45, %s1354_s21 }
  0x74   :  { %325 = vrot.lane.b32.xlu0 %v1928_v14, %s1354_s21  ;;  %975 = vmatmul.bf16.gmra.mxu2 %v515_v62  ;;  %v1942_v43 = vpop.permute.xlu2 %135  ;;  %v1944_v26 = vpop.permute.xlu1 %117  ;;  %v1962_v62 = vld [vmem:[%s2531_s0 + $0x218] sm:$0xff] }
  0x75   :  { %2594 = vst [vmem:[#allocation24_spill] sm:$0xff] %v1942_v43  ;;  %926 = vmatmul.bf16.gmra.mxu1 %v514_v31  ;;  %1024 = vmatmul.bf16.gmra.mxu3 %v516_v48  ;;  %v1946_v27 = vpop.permute.xlu0 %113 }
  0x77   :  { %1287 = vmatmul.msk.bf16.gmra.mxu0 %vm481_vm0, %v517_v63 }
  0x7b   :  { %335 = vrot.lane.b32.xlu2 %v1952_v55, %s1354_s21  ;;  %333 = vrot.lane.b32.xlu1 %v1957_v4, %s1354_s21 }
  0x7c   :  { %331 = vrot.lane.b32.xlu0 %v1962_v62, %s1354_s21  ;;  %v1970_v48 = vpop.permute.xlu2 %141  ;;  %v1972_v63 = vpop.permute.xlu1 %119 }
  0x7d   :  { %2595 = vst [vmem:[#allocation25_spill] sm:$0xff] %v1970_v48  ;;  %v116_v31 = vpop.permute.xlu0 %115  ;;  %v1990_v48 = vld [vmem:[%s2531_s0 + $0x160] sm:$0xff] }
  0x7e   :  { %v162_v8 = vmax.f32 %v1420_v7, %v116_v31  ;;  %2597 = vst [vmem:[#allocation27_spill] sm:$0xff] %v1990_v48  ;;  %v1995_v7 = vld [vmem:[%s2531_s0 + $0x188] sm:$0xff]  ;;  %v519_v31 = vpack.c.bf16 %v1700_v24, %v1717_v28 }
  0x7f   :  { %2598 = vst [vmem:[#allocation28_spill] sm:$0xff] %v1995_v7  ;;  %v522_v30 = vpack.c.bf16 %v1995_v7, %v1990_v48 }
  0x80   :  { %v2002_v43 = vmax.f32 %v162_v8, %v1541_v34 }
  0x83   :  { %405 = vrot.lane.b32.xlu2 %v1766_v40, %s1354_s21  ;;  %403 = vrot.lane.b32.xlu1 %v1690_v19, %s1354_s21 }
  0x84   :  { %401 = vrot.lane.b32.xlu0 %v1685_v18, %s1354_s21  ;;  %980 = vmatmul.bf16.gmra.mxu2 %v520_v3  ;;  %v128_v44 = vpop.permute.xlu1 %127  ;;  %v2012_v54 = vpop.permute.xlu2 %211 }
  0x85   :  { %931 = vmatmul.bf16.gmra.mxu1 %v519_v31  ;;  %1029 = vmatmul.bf16.gmra.mxu3 %v521_v15  ;;  %v2016_v8 = vpop.permute.xlu0 %125  ;;  %v168_v34 = vmax.f32 %v1442_v11, %v128_v44  ;;  %v2047_v15 = vld [vmem:[%s2531_s0 + $0x1b0] sm:$0xff]  ;;  %v2052_v11 = vld [vmem:[%s2531_s0 + $0x1d8] sm:$0xff]  ;;  %v524_v44 = vpack.c.bf16 %v1745_v37, %v1695_v23 }
  0x86   :  { %2601 = vst [vmem:[#allocation31_spill] sm:$0xff] %v2047_v15  ;;  %v527_v51 = vpack.c.bf16 %v2052_v11, %v2047_v15 }
  0x87   :  { %1288 = vmatmul.msk.bf16.gmra.mxu0 %vm481_vm0, %v522_v30  ;;  %v2035_v30 = vld [vmem:[%s2531_s0 + $0x1a8] sm:$0xff] }
  0x88   :  { %2600 = vst [vmem:[#allocation30_spill] sm:$0xff] %v2035_v30 }
  0x8b   :  { %411 = vrot.lane.b32.xlu2 %v1832_v57, %s1354_s21  ;;  %409 = vrot.lane.b32.xlu1 %v1827_v56, %s1354_s21  ;;  %v2040_v56 = vld [vmem:[%s2531_s0 + $0x1d0] sm:$0xff] }
  0x8c   :  { %407 = vrot.lane.b32.xlu0 %v1771_v41, %s1354_s21  ;;  %v134_v3 = vpop.permute.xlu1 %133  ;;  %v2025_v7 = vpop.permute.xlu2 %217  ;;  %v525_v41 = vpack.c.bf16 %v1911_v45, %v1928_v14  ;;  %v526_v18 = vpack.c.bf16 %v2040_v56, %v2035_v30 }
  0x8d   :  { %2599 = vst [vmem:[#allocation29_spill] sm:$0xff] %v2025_v7  ;;  %v2029_v31 = vpop.permute.xlu0 %131  ;;  %v2059_v7 = vmax.f32 %v168_v34, %v1636_v59  ;;  %v161_v34 = vmax.f32 %v1393_v2, %v1946_v27  ;;  %v171_v45 = vmax.f32 %v1469_v16, %v134_v3  ;;  %v2100_v3 = vld [vmem:[%s2531_s0 + $0x1f8] sm:$0xff] }
  0x8e   :  { %2603 = vst [vmem:[#allocation33_spill] sm:$0xff] %v2100_v3 }
  0x8f   :  { %v187_v15 = vmax.f32 %v171_v45, %v1695_v23 }
  0x93   :  { %417 = vrot.lane.b32.xlu2 %v1978_v13, %s1354_s21  ;;  %415 = vrot.lane.b32.xlu1 %v1901_v52, %s1354_s21 }
  0x94   :  { %413 = vrot.lane.b32.xlu0 %v1896_v0, %s1354_s21  ;;  %985 = vmatmul.bf16.gmra.mxu2 %v525_v41  ;;  %v140_v19 = vpop.permute.xlu1 %139  ;;  %v177_v41 = vmax.f32 %v161_v34, %v1546_v35  ;;  %v2095_v35 = vld [vmem:[%s2531_s0 + $0x220] sm:$0xff] }
  0x95   :  { %936 = vmatmul.bf16.gmra.mxu1 %v524_v44  ;;  %1034 = vmatmul.bf16.gmra.mxu3 %v526_v18  ;;  %v2069_v48 = vpop.permute.xlu2 %223  ;;  %v2071_v59 = vpop.permute.xlu0 %137  ;;  %v164_v18 = vmax.f32 %v1415_v6, %v1972_v63  ;;  %v174_v27 = vmax.f32 %v1491_v20, %v140_v19  ;;  %2602 = vst [vmem:[#allocation32_spill] sm:$0xff] %v2095_v35  ;;  %v2107_v6 = vld [vmem:[%s2531_s0 + $0x248] sm:$0xff]  ;;  %v2114_v19 = vld [vmem:[%s2531_s0 + $0x200] sm:$0xff] }
  0x96   :  { %v530_v20 = vpack.c.bf16 %v1962_v62, %v1906_v53  ;;  %2604 = vst [vmem:[#allocation34_spill] sm:$0xff] %v2114_v19  ;;  %v2119_v63 = vld [vmem:[%s2531_s0 + $0x228] sm:$0xff]  ;;  %v531_v34 = vpack.c.bf16 %v2095_v35, %v2100_v3 }
  0x97   :  { %1289 = vmatmul.msk.bf16.gmra.mxu0 %vm481_vm0, %v527_v51  ;;  %2605 = vst [vmem:[#allocation35_spill] sm:$0xff] %v2119_v63  ;;  %v532_v52 = vpack.c.bf16 %v2119_v63, %v2114_v19 }
  0x9b   :  { %423 = vrot.lane.b32.xlu2 %v2040_v56, %s1354_s21  ;;  %421 = vrot.lane.b32.xlu1 %v2035_v30, %s1354_s21  ;;  %v173_v30 = vmax.f32 %v1496_v21, %v2071_v59 }
  0x9c   :  { %419 = vrot.lane.b32.xlu0 %v1983_v22, %s1354_s21 }
  0x9d   :  { %v230_v2 = vpop.permute.xlu2 %229  ;;  %v210_v16 = vpop.permute.xlu1 %209  ;;  %v189_v21 = vmax.f32 %v173_v30, %v1740_v33 }
  0x9e   :  { %v267_v51 = vmax.f32 %v187_v15, %v230_v2  ;;  %v257_v23 = vmax.f32 %v177_v41, %v210_v16  ;;  %v2090_v45 = vpop.permute.xlu0 %143  ;;  %v529_v15 = vpack.c.bf16 %v1735_v32, %v1740_v33  ;;  %v190_v41 = vmax.f32 %v174_v27, %v1735_v32  ;;  %v2145_v27 = vld [vmem:[%s2533_s2] ss:$0 sm:$0xff] }
  0x9f   :  { %v180_v2 = vmax.f32 %v164_v18, %v1591_v46  ;;  %v167_v18 = vmax.f32 %v1447_v12, %v2016_v8  ;;  %v2161_v8 = vld [vmem:[%s2531_s0 + $0x270] sm:$0xff] }
  0xa0   :  { %v2102_v44 = vpop.f32.mrf.mxu1  ;;  %v2136_v22 = vmax.f32 %v267_v51, %v1928_v14  ;;  %2609 = vst [vmem:[#allocation39_spill] sm:$0xff] %v2161_v8 }
  0xa2   :  { %2606 = vst [vmem:[#allocation36_spill] sm:$0xff] %v2136_v22 }
  0xa3   :  { %429 = vrot.lane.b32.xlu2 %v2107_v6, %s1354_s21  ;;  %427 = vrot.lane.b32.xlu1 %v2095_v35, %s1354_s21  ;;  %v2131_v16 = vpop.f32.mrf.mxu0 }
  0xa4   :  { %425 = vrot.lane.b32.xlu0 %v2100_v3, %s1354_s21  ;;  %990 = vmatmul.bf16.gmra.mxu2 %v530_v20 }
  0xa5   :  { %941 = vmatmul.bf16.gmra.mxu1 %v529_v15  ;;  %1039 = vmatmul.bf16.gmra.mxu3 %v531_v34  ;;  %v236_v46 = vpop.permute.xlu2 %235  ;;  %v216_v32 = vpop.permute.xlu1 %215 }
  0xa6   :  { %v270_v19 = vmax.f32 %v190_v41, %v236_v46  ;;  %v260_v63 = vmax.f32 %v180_v2, %v216_v32  ;;  %v2147_v14 = vpop.permute.xlu0 %213  ;;  %v183_v41 = vmax.f32 %v167_v18, %v1641_v60  ;;  %v2172_v46 = vmax.f32 %v257_v23, %v1672_v9 }
  0xa7   :  { %1290 = vmatmul.msk.bf16.gmra.mxu0 %vm481_vm0, %v532_v52  ;;  %v883_v51 = vpop.f32.mrf.mxu2  ;;  %v893_v20 = vpop.f32.mrf.mxu3  ;;  %v535_v23 = vpack.c.bf16 %v1952_v55, %v1957_v4 }
  0xa8   :  { %v2151_v15 = vadd.f32 %v2145_v27, %v883_v51  ;;  %v2154_v34 = vadd.f32 %v2145_v27, %v893_v20  ;;  %v2156_v12 = vpop.f32.mrf.mxu1  ;;  %v2167_v52 = vmax.f32 %v270_v19, %v1962_v62  ;;  %v170_v20 = vmax.f32 %v1474_v17, %v2029_v31  ;;  %v2193_v17 = vld [vmem:[%s2531_s0 + $0x250] sm:$0xff]  ;;  %v2198_v31 = vld [vmem:[%s2531_s0 + $0x278] sm:$0xff] }
  0xa9   :  { %2613 = vst [vmem:[#allocation43_spill] sm:$0xff] %v2198_v31  ;;  %v537_v60 = vpack.c.bf16 %v2198_v31, %v2193_v17  ;;  %v2212_v35 = vmax.f32 %v260_v63, %v1761_v39 }
  0xaa   :  { %2607 = vst [vmem:[#allocation37_spill] sm:$0xff] %v2151_v15 }
  0xab   :  { %2608 = vst [vmem:[#allocation38_spill] sm:$0xff] %v2154_v34  ;;  %v2164_v2 = vpop.f32.mrf.mxu0 }
  0xac   :  { %2610 = vst [vmem:[#allocation40_spill] sm:$0xff] %v2167_v52  ;;  %431 = vrot.lane.b32.xlu0 %v2161_v8, %s1354_s21 }
  0xad   :  { %v2174_v32 = vpop.permute.xlu2 %305  ;;  %v222_v51 = vpop.permute.xlu1 %221 }
  0xae   :  { %v263_v18 = vmax.f32 %v183_v41, %v222_v51  ;;  %v2180_v34 = vpop.permute.xlu0 %219  ;;  %v534_v51 = vpack.c.bf16 %v1776_v42, %v1793_v49 }
  0xaf   :  { %v885_v62 = vpop.f32.mrf.mxu2  ;;  %v895_v19 = vpop.f32.mrf.mxu3 }
  0xb0   :  { %v2183_v3 = vadd.f32 %v2145_v27, %v885_v62  ;;  %v2186_v9 = vadd.f32 %v2145_v27, %v895_v19  ;;  %v536_v62 = vpack.c.bf16 %v2161_v8, %v2107_v6  ;;  %v186_v19 = vmax.f32 %v170_v20, %v1700_v24 }
  0xb1   :  { %v2200_v41 = vpop.f32.mrf.mxu1 }
  0xb2   :  { %2611 = vst [vmem:[#allocation41_spill] sm:$0xff] %v2183_v3 }
  0xb3   :  { %2612 = vst [vmem:[#allocation42_spill] sm:$0xff] %v2186_v9 }
  0xb4   :  { %v2209_v9 = vpop.f32.mrf.mxu0  ;;  %995 = vmatmul.bf16.gmra.mxu2 %v535_v23 }
  0xb5   :  { %946 = vmatmul.bf16.gmra.mxu1 %v534_v51  ;;  %1044 = vmatmul.bf16.gmra.mxu3 %v536_v62  ;;  %v2214_v52 = vpop.permute.xlu2 %311  ;;  %v228_v3 = vpop.permute.xlu1 %227 }
  0xb6   :  { %v266_v20 = vmax.f32 %v186_v19, %v228_v3  ;;  %v2220_v8 = vpop.permute.xlu0 %225  ;;  %v2235_v3 = vmax.f32 %v263_v18, %v1837_v58 }
  0xb7   :  { %1291 = vmatmul.msk.bf16.gmra.mxu0 %vm481_vm0, %v537_v60  ;;  %v888_v23 = vpop.f32.mrf.mxu2 }
  0xb8   :  { %v2224_v39 = vadd.f32 %v2145_v27, %v888_v23  ;;  %v898_v63 = vpop.f32.mrf.mxu3  ;;  %2616 = vst [vmem:[#allocation46_spill] sm:$0xff] %v2235_v3  ;;  %v176_v23 = vmax.f32 %v1551_v36, %v2090_v45  ;;  %v864_v36 = vadd.f32 %v2145_v27, %v2131_v16  ;;  %v2255_v24 = vmax.f32 %v266_v20, %v1869_v29 }
  0xb9   :  { %v2227_v51 = vadd.f32 %v2145_v27, %v898_v63  ;;  %v2229_v62 = vpop.f32.mrf.mxu1  ;;  %v163_v16 = vmax.f32 %v1388_v1, %v1944_v26  ;;  %v866_v29 = vadd.f32 %v2145_v27, %v2164_v2 }
  0xba   :  { %2614 = vst [vmem:[#allocation44_spill] sm:$0xff] %v2224_v39  ;;  %v192_v39 = vmax.f32 %v176_v23, %v1776_v42 }
  0xbb   :  { %2615 = vst [vmem:[#allocation45_spill] sm:$0xff] %v2227_v51 }
  0xbc   :  { %v2232_v59 = vpop.f32.mrf.mxu0 }
  0xbd   :  { %v2237_v19 = vpop.permute.xlu2 %317  ;;  %v234_v60 = vpop.permute.xlu1 %233 }
  0xbe   :  { %2617 = vst [vmem:[#allocation47_spill] sm:$0xff] %v2237_v19  ;;  %v269_v63 = vmax.f32 %v189_v21, %v234_v60  ;;  %v2243_v51 = vpop.permute.xlu0 %231 }
  0xbf   :  { %v890_v31 = vpop.f32.mrf.mxu2 }
  0xc0   :  { %v2246_v33 = vadd.f32 %v2145_v27, %v890_v31  ;;  %v900_v30 = vpop.f32.mrf.mxu3 }
  0xc1   :  { %v2249_v58 = vadd.f32 %v2145_v27, %v900_v30 }
  0xc2   :  { %2618 = vst [vmem:[#allocation48_spill] sm:$0xff] %v2246_v33  ;;  %v912_v18 = vpop.f32.mrf.mxu1 }
  0xc3   :  { %2619 = vst [vmem:[#allocation49_spill] sm:$0xff] %v2249_v58  ;;  %v913_v22 = vadd.f32 %v912_v18, %v864_v36  ;;  %v2268_v18 = vmax.f32 %v269_v63, %v1906_v53  ;;  %v166_v63 = vmax.f32 %v1410_v5, %v1863_v25 }
  0xc4   :  { %v1059_v45 = vpop.f32.mrf.mxu0 }
  0xc5   :  { %v2257_v21 = vpop.permute.xlu2 %323  ;;  %v240_v60 = vpop.permute.xlu1 %239 }
  0xc6   :  { %v362_v31 = vmax.f32 %v2255_v24, %v2257_v21  ;;  %v272_v33 = vmax.f32 %v192_v39, %v240_v60  ;;  %v2261_v30 = vpop.permute.xlu0 %237  ;;  %v2661_v21 = vld [vmem:[#allocation28_spill] sm:$0xff] }
  0xc7   :  { %v961_v58 = vpop.f32.mrf.mxu2 }
  0xc8   :  { %v962_v15 = vadd.f32 %v961_v58, %v913_v22  ;;  %v1010_v42 = vpop.f32.mrf.mxu3  ;;  %v179_v22 = vmax.f32 %v163_v16, %v1596_v47 }
  0xca   :  { %v1011_v23 = vadd.f32 %v1010_v42, %v962_v15  ;;  %v914_v19 = vpop.f32.mrf.mxu1  ;;  %v259_v47 = vmax.f32 %v179_v22, %v2147_v14  ;;  %v869_v42 = vadd.f32 %v2145_v27, %v2209_v9 }
  0xcb   :  { %v915_v60 = vadd.f32 %v914_v19, %v866_v29  ;;  %v2287_v29 = vmax.f32 %v272_v33, %v1952_v55  ;;  %v169_v33 = vmax.f32 %v1437_v10, %v1888_v50 }
  0xcc   :  { %v1060_v20 = vadd.f32 %v1059_v45, %v1011_v23  ;;  %v1061_v3 = vpop.f32.mrf.mxu0 }
  0xcd   :  { %v2270_v39 = vpop.permute.xlu2 %329  ;;  %v310_v36 = vpop.permute.xlu1 %309 }
  0xce   :  { %v1099_v58 = vmax.f32 %v1060_v20, 0.0  ;;  %v365_v1 = vmax.f32 %v2268_v18, %v2270_v39  ;;  %v2275_v26 = vpop.permute.xlu0 %307  ;;  %v182_v20 = vmax.f32 %v166_v63, %v1646_v61  ;;  %v871_v63 = vadd.f32 %v2145_v27, %v2232_v59  ;;  %v2621_v59 = vld [vmem:[#allocation10_spill] sm:$0xff] }
  0xcf   :  { %v963_v15 = vpop.f32.mrf.mxu2 }
  0xd0   :  { %1116 = vst.msk [vmem:[%s2534_s4] sm:$0xff] %vm1115_vm1, %v1099_v58  ;;  %v964_v53 = vadd.f32 %v963_v15, %v915_v60  ;;  %v1012_v2 = vpop.f32.mrf.mxu3  ;;  %v275_v15 = vmax.f32 %v259_v47, %v1756_v38  ;;  %v262_v38 = vmax.f32 %v182_v20, %v2180_v34 }
  0xd2   :  { %v1013_v45 = vadd.f32 %v1012_v2, %v964_v53  ;;  %v917_v19 = vpop.f32.mrf.mxu1 }
  0xd3   :  { %v918_v25 = vadd.f32 %v917_v19, %v869_v42  ;;  %v185_v19 = vmax.f32 %v169_v33, %v1717_v28 }
  0xd4   :  { %v1062_v16 = vadd.f32 %v1061_v3, %v1013_v45  ;;  %v1064_v23 = vpop.f32.mrf.mxu0  ;;  %v355_v3 = vmax.f32 %v275_v15, %v310_v36  ;;  %v2620_v15 = vld [vmem:[#allocation12_spill] sm:$0xff] }
  0xd5   :  { %v2290_v58 = vpop.permute.xlu2 %335  ;;  %v316_v60 = vpop.permute.xlu1 %315  ;;  %v265_v33 = vmax.f32 %v185_v19, %v2220_v8 }
  0xd6   :  { %v1100_v5 = vmax.f32 %v1062_v16, 0.0  ;;  %v368_v14 = vmax.f32 %v2287_v29, %v2290_v58  ;;  %v2295_v22 = vpop.permute.xlu0 %313  ;;  %v371_v36 = vmax.f32 %v355_v3, %v1766_v40  ;;  %v2622_v3 = vld [vmem:[#allocation24_spill] sm:$0xff] }
  0xd7   :  { %v966_v9 = vpop.f32.mrf.mxu2 }
  0xd8   :  { %1117 = vst.msk [vmem:[%s2534_s4 + $0x8] sm:$0xff] %vm1115_vm1, %v1100_v5  ;;  %v967_v61 = vadd.f32 %v966_v9, %v918_v25  ;;  %v1015_v55 = vpop.f32.mrf.mxu3  ;;  %v278_v5 = vmax.f32 %v262_v38, %v2620_v15 }
  0xda   :  { %v1016_v53 = vadd.f32 %v1015_v55, %v967_v61  ;;  %v919_v2 = vpop.f32.mrf.mxu1  ;;  %v358_v20 = vmax.f32 %v278_v5, %v316_v60  ;;  %v2623_v61 = vld [vmem:[#allocation2_spill] sm:$0xff]  ;;  %v2624_v5 = vld [vmem:[#allocation17_spill] sm:$0xff] }
  0xdb   :  { %v920_v9 = vadd.f32 %v919_v2, %v871_v63  ;;  %v172_v55 = vmax.f32 %v2623_v61, %v2622_v3  ;;  %v281_v8 = vmax.f32 %v265_v33, %v2624_v5  ;;  %v876_v61 = vadd.f32 %v2145_v27, %v2156_v12 }
  0xdc   :  { %v1065_v47 = vadd.f32 %v1064_v23, %v1016_v53  ;;  %v1066_v45 = vpop.f32.mrf.mxu0  ;;  %v874_v53 = vadd.f32 %v2145_v27, %v2102_v44  ;;  %v2625_v44 = vld [vmem:[#allocation16_spill] sm:$0xff] }
  0xdd   :  { %v406_v42 = vpop.permute.xlu2 %405  ;;  %v322_v16 = vpop.permute.xlu1 %321 }
  0xde   :  { %v1101_v25 = vmax.f32 %v1065_v47, 0.0  ;;  %v451_v10 = vmax.f32 %v371_v36, %v406_v42  ;;  %v2309_v50 = vpop.permute.xlu0 %319  ;;  %v374_v47 = vmax.f32 %v358_v20, %v1832_v57  ;;  %v188_v36 = vmax.f32 %v172_v55, %v1745_v37  ;;  %v2626_v20 = vld [vmem:[#allocation25_spill] sm:$0xff] }
  0xdf   :  { %v968_v34 = vpop.f32.mrf.mxu2 }
  0xe0   :  { %1118 = vst.msk [vmem:[%s2534_s4 + $0x10] sm:$0xff] %vm1115_vm1, %v1101_v25  ;;  %v467_v40 = vmax.f32 %v451_v10, %v2621_v59  ;;  %v969_v23 = vadd.f32 %v968_v34, %v920_v9  ;;  %v1017_v28 = vpop.f32.mrf.mxu3  ;;  %v361_v59 = vmax.f32 %v281_v8, %v322_v16 }
  0xe2   :  { %484 = vst.msk [vmem:[%s2535_s3 + $0x10] sm:$0xff] %vm481_vm0, %v467_v40  ;;  %v1018_v60 = vadd.f32 %v1017_v28, %v969_v23  ;;  %v922_v38 = vpop.f32.mrf.mxu1  ;;  %v2627_v40 = vld [vmem:[#allocation3_spill] sm:$0xff]  ;;  %v268_v28 = vmax.f32 %v188_v36, %v2243_v51  ;;  %v2629_v51 = vmax.f32 %v2002_v43, %v2012_v54 }
  0xe3   :  { %v923_v25 = vadd.f32 %v922_v38, %v874_v53  ;;  %v175_v23 = vmax.f32 %v2627_v40, %v2626_v20  ;;  %v2628_v53 = vld [vmem:[#allocation4_spill] sm:$0xff]  ;;  %v2632_v20 = vld [vmem:[#allocation6_spill] sm:$0xff] }
  0xe4   :  { %v1067_v2 = vadd.f32 %v1066_v45, %v1018_v60  ;;  %v1069_v63 = vpop.f32.mrf.mxu0  ;;  %v377_v60 = vmax.f32 %v361_v59, %v1978_v13 }
  0xe5   :  { %v412_v42 = vpop.permute.xlu2 %411  ;;  %v328_v15 = vpop.permute.xlu1 %327  ;;  %v191_v38 = vmax.f32 %v175_v23, %v1793_v49  ;;  %v2631_v49 = vld [vmem:[#allocation27_spill] sm:$0xff]  ;;  %v2633_v23 = vld [vmem:[#allocation13_spill] sm:$0xff] }
  0xe6   :  { %v1102_v19 = vmax.f32 %v1067_v2, 0.0  ;;  %v454_v9 = vmax.f32 %v374_v47, %v412_v42  ;;  %v2328_v10 = vpop.permute.xlu0 %325  ;;  %v274_v2 = vmax.f32 %v2629_v51, %v2628_v53  ;;  %v2630_v42 = vld [vmem:[#allocation21_spill] sm:$0xff]  ;;  %v2638_v53 = vmax.f32 %v2172_v46, %v2174_v32 }
  0xe7   :  { %v971_v34 = vpop.f32.mrf.mxu2  ;;  %v284_v5 = vmax.f32 %v268_v28, %v2630_v42  ;;  %v271_v59 = vmax.f32 %v191_v38, %v2261_v30  ;;  %v2634_v28 = vld [vmem:[#allocation19_spill] sm:$0xff]  ;;  %v2637_v38 = vld [vmem:[#allocation5_spill] sm:$0xff] }
  0xe8   :  { %1119 = vst.msk [vmem:[%s2534_s4 + $0x18] sm:$0xff] %vm1115_vm1, %v1102_v19  ;;  %v470_v57 = vmax.f32 %v454_v9, %v2625_v44  ;;  %v972_v45 = vadd.f32 %v971_v34, %v923_v25  ;;  %v1020_v37 = vpop.f32.mrf.mxu3 }
  0xe9   :  { %v364_v13 = vmax.f32 %v284_v5, %v328_v15 }
  0xea   :  { %487 = vst.msk [vmem:[%s2535_s3 + $0x28] sm:$0xff] %vm481_vm0, %v470_v57  ;;  %v1021_v16 = vadd.f32 %v1020_v37, %v972_v45  ;;  %v924_v3 = vpop.f32.mrf.mxu1 }
  0xeb   :  { %v925_v19 = vadd.f32 %v924_v3, %v876_v61  ;;  %v380_v37 = vmax.f32 %v364_v13, %v2040_v56  ;;  %v287_v61 = vmax.f32 %v271_v59, %v1957_v4 }
  0xec   :  { %v1070_v55 = vadd.f32 %v1069_v63, %v1021_v16  ;;  %v1071_v33 = vpop.f32.mrf.mxu0  ;;  %v354_v63 = vmax.f32 %v274_v2, %v2275_v26  ;;  %v879_v26 = vadd.f32 %v2145_v27, %v2200_v41  ;;  %v2635_v16 = vld [vmem:[#allocation29_spill] sm:$0xff]  ;;  %v369_v41 = vmax.f32 %v2638_v53, %v2637_v38 }
  0xed   :  { %v418_v47 = vpop.permute.xlu2 %417  ;;  %v334_v36 = vpop.permute.xlu1 %333  ;;  %v2636_v30 = vmax.f32 %v2634_v28, %v2635_v16 }
  0xee   :  { %v1103_v8 = vmax.f32 %v1070_v55, 0.0  ;;  %v457_v25 = vmax.f32 %v377_v60, %v418_v47  ;;  %v2351_v9 = vpop.permute.xlu0 %331  ;;  %v370_v40 = vmax.f32 %v354_v63, %v2632_v20  ;;  %v2640_v63 = vld [vmem:[#allocation7_spill] sm:$0xff]  ;;  %v2644_v20 = vld [vmem:[#allocation9_spill] sm:$0xff] }
  0xef   :  { %v973_v12 = vpop.f32.mrf.mxu2  ;;  %v277_v3 = vmax.f32 %v2636_v30, %v2633_v23 }
  0xf0   :  { %1120 = vst.msk [vmem:[%s2534_s4 + $0x20] sm:$0xff] %vm1115_vm1, %v1103_v8  ;;  %v473_v54 = vmax.f32 %v457_v25, %v2631_v49  ;;  %v974_v43 = vadd.f32 %v973_v12, %v925_v19  ;;  %v1022_v34 = vpop.f32.mrf.mxu3  ;;  %v367_v19 = vmax.f32 %v287_v61, %v334_v36  ;;  %v2639_v25 = vld [vmem:[#allocation8_spill] sm:$0xff] }
  0xf1   :  { %v357_v42 = vmax.f32 %v277_v3, %v2295_v22 }
  0xf2   :  { %490 = vst.msk [vmem:[%s2535_s3 + $0x40] sm:$0xff] %vm481_vm0, %v473_v54  ;;  %v1023_v44 = vadd.f32 %v1022_v34, %v974_v43  ;;  %v927_v57 = vpop.f32.mrf.mxu1  ;;  %v383_v43 = vmax.f32 %v367_v19, %v2107_v6  ;;  %v2641_v34 = vld [vmem:[#allocation14_spill] sm:$0xff] }
  0xf3   :  { %v928_v51 = vadd.f32 %v927_v57, %v879_v26  ;;  %v373_v59 = vmax.f32 %v357_v42, %v2641_v34  ;;  %v2643_v57 = vmax.f32 %v2059_v7, %v2069_v48  ;;  %v2646_v7 = vld [vmem:[#allocation15_spill] sm:$0xff] }
  0xf4   :  { %v1072_v15 = vadd.f32 %v1071_v33, %v1023_v44  ;;  %v1074_v45 = vpop.f32.mrf.mxu0  ;;  %v2642_v44 = vld [vmem:[#allocation18_spill] sm:$0xff] }
  0xf5   :  { %v424_v55 = vpop.permute.xlu2 %423  ;;  %v404_v60 = vpop.permute.xlu1 %403  ;;  %v280_v26 = vmax.f32 %v2643_v57, %v2642_v44 }
  0xf6   :  { %v1104_v33 = vmax.f32 %v1072_v15, 0.0  ;;  %v460_v2 = vmax.f32 %v380_v37, %v424_v55  ;;  %v450_v56 = vmax.f32 %v370_v40, %v404_v60  ;;  %v402_v47 = vpop.permute.xlu0 %401  ;;  %v2647_v55 = vld [vmem:[#allocation11_spill] sm:$0xff] }
  0xf7   :  { %v449_v5 = vmax.f32 %v369_v41, %v402_v47  ;;  %v976_v8 = vpop.f32.mrf.mxu2  ;;  %v360_v3 = vmax.f32 %v280_v26, %v2309_v50  ;;  %v2648_v41 = vld [vmem:[#allocation20_spill] sm:$0xff]  ;;  %v2657_v26 = vld [vmem:[#allocation26_spill] sm:$0xff] }
  0xf8   :  { %1121 = vst.msk [vmem:[%s2534_s4 + $0x28] sm:$0xff] %vm1115_vm1, %v1104_v33  ;;  %v476_v4 = vmax.f32 %v460_v2, %v2052_v11  ;;  %v466_v46 = vmax.f32 %v450_v56, %v2639_v25  ;;  %v977_v32 = vadd.f32 %v976_v8, %v928_v51  ;;  %v1025_v12 = vpop.f32.mrf.mxu3  ;;  %v881_v11 = vadd.f32 %v2145_v27, %v2229_v62  ;;  %v2649_v2 = vld [vmem:[#allocation46_spill] sm:$0xff]  ;;  %v2650_v56 = vld [vmem:[#allocation47_spill] sm:$0xff]  ;;  %v2652_v8 = vld [vmem:[#allocation37_spill] sm:$0xff] }
  0xf9   :  { %v465_v13 = vmax.f32 %v449_v5, %v2640_v63  ;;  %v2645_v27 = vmax.f32 %v2212_v35, %v2214_v52  ;;  %v376_v33 = vmax.f32 %v360_v3, %v2648_v41  ;;  %v2651_v47 = vmax.f32 %v2649_v2, %v2650_v56  ;;  %v2665_v56 = vld [vmem:[#allocation35_spill] sm:$0xff] }
  0xfa   :  { %493 = vst.msk [vmem:[%s2535_s3 + $0x58] sm:$0xff] %vm481_vm0, %v476_v4  ;;  %v1026_v22 = vadd.f32 %v1025_v12, %v977_v32  ;;  %v929_v36 = vpop.f32.mrf.mxu1  ;;  %v2653_v12 = vld [vmem:[#allocation36_spill] sm:$0xff] }
  0xfb   :  { %483 = vst.msk [vmem:[%s2535_s3 + $0x8] sm:$0xff] %vm481_vm0, %v466_v46  ;;  %v372_v62 = vmax.f32 %v2645_v27, %v2644_v20  ;;  %v930_v23 = vadd.f32 %v929_v36, %v881_v11  ;;  %v375_v42 = vmax.f32 %v2651_v47, %v1896_v0  ;;  %v363_v63 = vmax.f32 %v2653_v12, %v2328_v10  ;;  %v2655_v0 = vld [vmem:[#allocation22_spill] sm:$0xff]  ;;  %v2658_v20 = vld [vmem:[#allocation41_spill] sm:$0xff]  ;;  %v2668_v12 = vld [vmem:[#allocation48_spill] sm:$0xff] }
  0xfc   :  { %482 = vst.msk [vmem:[%s2535_s3] sm:$0xff] %vm481_vm0, %v465_v13  ;;  %v1075_v49 = vadd.f32 %v1074_v45, %v1026_v22  ;;  %v1076_v54 = vpop.f32.mrf.mxu0  ;;  %v2654_v13 = vld [vmem:[#allocation23_spill] sm:$0xff] }
  0xfd   :  { %v430_v15 = vpop.permute.xlu2 %429  ;;  %v410_v37 = vpop.permute.xlu1 %409 }
  0xfe   :  { %v1105_v40 = vmax.f32 %v1075_v49, 0.0  ;;  %v463_v45 = vmax.f32 %v383_v43, %v430_v15  ;;  %v453_v28 = vmax.f32 %v373_v59, %v410_v37  ;;  %v408_v16 = vpop.permute.xlu0 %407  ;;  %v2656_v59 = vld [vmem:[#allocation30_spill] sm:$0xff]  ;;  %v378_v15 = vmax.f32 %v362_v31, %v2657_v26 }
  0xff   :  { %v452_v6 = vmax.f32 %v372_v62, %v408_v16  ;;  %v978_v30 = vpop.f32.mrf.mxu2  ;;  %v379_v44 = vmax.f32 %v363_v63, %v2656_v59 }
 0x100   :  { %1122 = vst.msk [vmem:[%s2534_s4 + $0x30] sm:$0xff] %vm1115_vm1, %v1105_v40  ;;  %v479_v48 = vmax.f32 %v463_v45, %v2193_v17  ;;  %v469_v61 = vmax.f32 %v453_v28, %v2646_v7  ;;  %v979_v35 = vadd.f32 %v978_v30, %v930_v23  ;;  %v1027_v52 = vpop.f32.mrf.mxu3  ;;  %v2659_v28 = vld [vmem:[#allocation40_spill] sm:$0xff] }
 0x101   :  { %v468_v60 = vmax.f32 %v452_v6, %v2647_v55  ;;  %v366_v16 = vmax.f32 %v2659_v28, %v2351_v9  ;;  %v2660_v6 = vld [vmem:[#allocation31_spill] sm:$0xff] }
 0x102   :  { %496 = vst.msk [vmem:[%s2535_s3 + $0x70] sm:$0xff] %vm481_vm0, %v479_v48  ;;  %v1028_v38 = vadd.f32 %v1027_v52, %v979_v35  ;;  %v932_v50 = vpop.f32.mrf.mxu1  ;;  %v2662_v35 = vld [vmem:[#allocation32_spill] sm:$0xff] }
 0x103   :  { %486 = vst.msk [vmem:[%s2535_s3 + $0x20] sm:$0xff] %vm481_vm0, %v469_v61  ;;  %v933_v19 = vadd.f32 %v932_v50, %v2652_v8  ;;  %v382_v52 = vmax.f32 %v366_v16, %v2662_v35  ;;  %v2666_v8 = vld [vmem:[#allocation34_spill] sm:$0xff] }
 0x104   :  { %485 = vst.msk [vmem:[%s2535_s3 + $0x18] sm:$0xff] %vm481_vm0, %v468_v60  ;;  %v1077_v17 = vadd.f32 %v1076_v54, %v1028_v38  ;;  %v1079_v53 = vpop.f32.mrf.mxu0  ;;  %v2663_v60 = vld [vmem:[#allocation33_spill] sm:$0xff] }
 0x105   :  { %v416_v51 = vpop.permute.xlu1 %415  ;;  %v381_v38 = vmax.f32 %v365_v1, %v2663_v60 }
 0x106   :  { %v1106_v5 = vmax.f32 %v1077_v17, 0.0  ;;  %v456_v4 = vmax.f32 %v376_v33, %v416_v51  ;;  %v414_v25 = vpop.permute.xlu0 %413  ;;  %v2664_v17 = vld [vmem:[#allocation44_spill] sm:$0xff] }
 0x107   :  { %v455_v46 = vmax.f32 %v375_v42, %v414_v25  ;;  %v981_v32 = vpop.f32.mrf.mxu2  ;;  %v2667_v25 = vld [vmem:[#allocation39_spill] sm:$0xff] }
 0x108   :  { %1123 = vst.msk [vmem:[%s2534_s4 + $0x38] sm:$0xff] %vm1115_vm1, %v1106_v5  ;;  %v472_v22 = vmax.f32 %v456_v4, %v2654_v13  ;;  %v982_v36 = vadd.f32 %v981_v32, %v933_v19  ;;  %v1030_v11 = vpop.f32.mrf.mxu3 }
 0x109   :  { %v471_v49 = vmax.f32 %v455_v46, %v2655_v0  ;;  %v384_v46 = vmax.f32 %v368_v14, %v2667_v25 }
 0x10a   :  { %489 = vst.msk [vmem:[%s2535_s3 + $0x38] sm:$0xff] %vm481_vm0, %v472_v22  ;;  %v1031_v54 = vadd.f32 %v1030_v11, %v982_v36  ;;  %v934_v43 = vpop.f32.mrf.mxu1 }
 0x10b   :  { %488 = vst.msk [vmem:[%s2535_s3 + $0x30] sm:$0xff] %vm481_vm0, %v471_v49  ;;  %v935_v27 = vadd.f32 %v934_v43, %v2658_v20  ;;  %v2669_v49 = vld [vmem:[#allocation43_spill] sm:$0xff] }
 0x10c   :  { %v1080_v10 = vadd.f32 %v1079_v53, %v1031_v54  ;;  %v1081_v34 = vpop.f32.mrf.mxu0 }
 0x10d   :  { %v422_v57 = vpop.permute.xlu1 %421 }
 0x10e   :  { %v1107_v37 = vmax.f32 %v1080_v10, 0.0  ;;  %v459_v62 = vmax.f32 %v379_v44, %v422_v57  ;;  %v420_v40 = vpop.permute.xlu0 %419 }
 0x10f   :  { %v458_v23 = vmax.f32 %v378_v15, %v420_v40  ;;  %v983_v45 = vpop.f32.mrf.mxu2 }
 0x110   :  { %1124 = vst.msk [vmem:[%s2534_s4 + $0x40] sm:$0xff] %vm1115_vm1, %v1107_v37  ;;  %v475_v30 = vmax.f32 %v459_v62, %v2660_v6  ;;  %v984_v3 = vadd.f32 %v983_v45, %v935_v27  ;;  %v1032_v24 = vpop.f32.mrf.mxu3  ;;  %v2671_v62 = vld [vmem:[#allocation42_spill] sm:$0xff] }
 0x111   :  { %v474_v31 = vmax.f32 %v458_v23, %v2661_v21  ;;  %v2672_v21 = vld [vmem:[#allocation45_spill] sm:$0xff] }
 0x112   :  { %492 = vst.msk [vmem:[%s2535_s3 + $0x50] sm:$0xff] %vm481_vm0, %v475_v30  ;;  %v1033_v48 = vadd.f32 %v1032_v24, %v984_v3  ;;  %v937_v7 = vpop.f32.mrf.mxu1 }
 0x113   :  { %491 = vst.msk [vmem:[%s2535_s3 + $0x48] sm:$0xff] %vm481_vm0, %v474_v31  ;;  %v938_v53 = vadd.f32 %v937_v7, %v2664_v17 }
 0x114   :  { %v1082_v9 = vadd.f32 %v1081_v34, %v1033_v48  ;;  %v1084_v61 = vpop.f32.mrf.mxu0  ;;  %v2670_v34 = vld [vmem:[#allocation38_spill] sm:$0xff] }
 0x115   :  { %v428_v55 = vpop.permute.xlu1 %427 }
 0x116   :  { %v1108_v50 = vmax.f32 %v1082_v9, 0.0  ;;  %v462_v41 = vmax.f32 %v382_v52, %v428_v55  ;;  %v426_v33 = vpop.permute.xlu0 %425 }
 0x117   :  { %v461_v51 = vmax.f32 %v381_v38, %v426_v33  ;;  %v986_v2 = vpop.f32.mrf.mxu2  ;;  %v2673_v38 = vld [vmem:[#allocation49_spill] sm:$0xff] }
 0x118   :  { %1125 = vst.msk [vmem:[%s2534_s4 + $0x48] sm:$0xff] %vm1115_vm1, %v1108_v50  ;;  %v478_v47 = vmax.f32 %v462_v41, %v2665_v56  ;;  %v987_v42 = vadd.f32 %v986_v2, %v938_v53  ;;  %v1035_v5 = vpop.f32.mrf.mxu3 }
 0x119   :  { %v477_v19 = vmax.f32 %v461_v51, %v2666_v8 }
 0x11a   :  { %495 = vst.msk [vmem:[%s2535_s3 + $0x68] sm:$0xff] %vm481_vm0, %v478_v47  ;;  %v1036_v18 = vadd.f32 %v1035_v5, %v987_v42  ;;  %v939_v39 = vpop.f32.mrf.mxu1 }
 0x11b   :  { %494 = vst.msk [vmem:[%s2535_s3 + $0x60] sm:$0xff] %vm481_vm0, %v477_v19  ;;  %v940_v63 = vadd.f32 %v939_v39, %v2668_v12 }
 0x11c   :  { %v1085_v1 = vadd.f32 %v1084_v61, %v1036_v18  ;;  %v1086_v4 = vpop.f32.mrf.mxu0 }
 0x11e   :  { %v1109_v32 = vmax.f32 %v1085_v1, 0.0  ;;  %v432_v13 = vpop.permute.xlu0 %431 }
 0x11f   :  { %v464_v22 = vmax.f32 %v384_v46, %v432_v13  ;;  %v988_v36 = vpop.f32.mrf.mxu2 }
 0x120   :  { %1126 = vst.msk [vmem:[%s2534_s4 + $0x50] sm:$0xff] %vm1115_vm1, %v1109_v32  ;;  %v989_v11 = vadd.f32 %v988_v36, %v940_v63  ;;  %v1037_v0 = vpop.f32.mrf.mxu3 }
 0x121   :  { %v480_v54 = vmax.f32 %v464_v22, %v2669_v49 }
 0x122   :  { %v1038_v43 = vadd.f32 %v1037_v0, %v989_v11  ;;  %v942_v10 = vpop.f32.mrf.mxu1 }
 0x123   :  { %497 = vst.msk [vmem:[%s2535_s3 + $0x78] sm:$0xff] %vm481_vm0, %v480_v54  ;;  %v943_v59 = vadd.f32 %v942_v10, %v2670_v34 }
 0x124   :  { %v1087_v29 = vadd.f32 %v1086_v4, %v1038_v43  ;;  %v1089_v58 = vpop.f32.mrf.mxu0 }
 0x126   :  { %v1110_v14 = vmax.f32 %v1087_v29, 0.0 }
 0x127   :  { %v991_v44 = vpop.f32.mrf.mxu2 }
 0x128   :  { %1127 = vst.msk [vmem:[%s2534_s4 + $0x58] sm:$0xff] %vm1115_vm1, %v1110_v14  ;;  %v992_v57 = vadd.f32 %v991_v44, %v943_v59  ;;  %v1040_v26 = vpop.f32.mrf.mxu3 }
 0x12a   :  { %v1041_v15 = vadd.f32 %v1040_v26, %v992_v57  ;;  %v944_v37 = vpop.f32.mrf.mxu1 }
 0x12b   :  { %v945_v40 = vadd.f32 %v944_v37, %v2671_v62 }
 0x12c   :  { %v1090_v20 = vadd.f32 %v1089_v58, %v1041_v15  ;;  %v1091_v23 = vpop.f32.mrf.mxu0 }
 0x12e   :  { %v1111_v27 = vmax.f32 %v1090_v20, 0.0 }
 0x12f   :  { %v993_v45 = vpop.f32.mrf.mxu2 }
 0x130   :  { %1128 = vst.msk [vmem:[%s2534_s4 + $0x60] sm:$0xff] %vm1115_vm1, %v1111_v27  ;;  %v994_v28 = vadd.f32 %v993_v45, %v945_v40  ;;  %v1042_v16 = vpop.f32.mrf.mxu3 }
 0x132   :  { %v1043_v6 = vadd.f32 %v1042_v16, %v994_v28  ;;  %v947_v30 = vpop.f32.mrf.mxu1 }
 0x133   :  { %v948_v31 = vadd.f32 %v947_v30, %v2672_v21 }
 0x134   :  { %v1092_v3 = vadd.f32 %v1091_v23, %v1043_v6  ;;  %v1094_v61 = vpop.f32.mrf.mxu0 }
 0x136   :  { %v1112_v24 = vmax.f32 %v1092_v3, 0.0 }
 0x137   :  { %v996_v48 = vpop.f32.mrf.mxu2 }
 0x138   :  { %1129 = vst.msk [vmem:[%s2534_s4 + $0x68] sm:$0xff] %vm1115_vm1, %v1112_v24  ;;  %v997_v7 = vadd.f32 %v996_v48, %v948_v31  ;;  %v1045_v9 = vpop.f32.mrf.mxu3 }
 0x13a   :  { %v1046_v35 = vadd.f32 %v1045_v9, %v997_v7  ;;  %v949_v52 = vpop.f32.mrf.mxu1 }
 0x13b   :  { %v950_v50 = vadd.f32 %v949_v52, %v2673_v38 }
 0x13c   :  { %v1095_v55 = vadd.f32 %v1094_v61, %v1046_v35  ;;  %v1096_v51 = vpop.f32.mrf.mxu0 }
 0x13e   :  { %v1113_v60 = vmax.f32 %v1095_v55, 0.0 }
 0x13f   :  { %v998_v17 = vpop.f32.mrf.mxu2 }
 0x140   :  { %1130 = vst.msk [vmem:[%s2534_s4 + $0x70] sm:$0xff] %vm1115_vm1, %v1113_v60  ;;  %v999_v53 = vadd.f32 %v998_v17, %v950_v50  ;;  %v1047_v41 = vpop.f32.mrf.mxu3 }
 0x142   :  { %v1048_v33 = vadd.f32 %v1047_v41, %v999_v53 }
 0x144   :  { %v1097_v2 = vadd.f32 %v1096_v51, %v1048_v33 }
 0x146   :  { %v1114_v56 = vmax.f32 %v1097_v2, 0.0 }
 0x148   :  { %1131 = vst.msk [vmem:[%s2534_s4 + $0x78] sm:$0xff] %vm1115_vm1, %v1114_v56 }

</bundles_post_ra>
